<compile_context>
chip_gen: v5e
topology: v5e:2x2
jax: 0.10.0
libtpu: 0.0.40
codegen_flags: <defaults>
</compile_context>

<pallas_src>
import jax
import jax.numpy as jnp
from jax.experimental import pallas as pl
from jax.experimental.pallas import tpu as pltpu


def _nconv_dyn_kernel(x_ref, a_ref, o_ref):
    # x_ref: (TL, C, V), a_ref: (TL, V, W), o_ref: (TL, C, W)
    # Leading-batch MXU matmul; accumulate in f32, write directly to the output.
    o_ref[...] = jnp.einsum(
        "lcv,lvw->lcw",
        x_ref[...],
        a_ref[...],
        preferred_element_type=jnp.float32,
    ).astype(o_ref.dtype)


def _pick_l_tile(L, per_l_bytes, budget_bytes):
    """Largest divisor of L whose double-buffered block footprint fits the budget."""
    tl = 1
    for d in range(1, L + 1):
        if L % d == 0 and 2 * d * per_l_bytes <= budget_bytes:
            tl = d
    return tl


def nconv_gcnm_dynamic(x, A):
    """x: (N, C, V, L), A: (N, V, W, L) -> (N, C, W, L)  (== 'ncvl,nvwl->ncwl')."""
    N, C, V, L = x.shape
    Na, Va, W, La = A.shape
    assert Na == N and Va == V and La == L, "shape mismatch between x and A"

    out_dtype = x.dtype
    itemsize = jnp.dtype(out_dtype).itemsize

    # Wrapper-side layout plumbing (XLA transposes), so the kernel sees a
    # leading-batch matmul with the contraction dim V on lanes/sublanes and a
    # lane-dense W-wide output row.
    xt = jnp.transpose(x, (0, 3, 1, 2))  # (N, L, C, V)
    at = jnp.transpose(A, (0, 3, 1, 2))  # (N, L, V, W)

    # Size the L tile from a conservative VMEM budget (fits v5e's 16 MiB scoped
    # default with double-buffering; comfortably within v6e/v7x).
    per_l_bytes = itemsize * (C * V + V * W + C * W)
    tl = _pick_l_tile(L, per_l_bytes, budget_bytes=10 * 1024 * 1024)
    grid = (N, L // tl)

    cost = pl.CostEstimate(
        flops=2 * N * C * W * L * V,
        transcendentals=0,
        bytes_accessed=itemsize * (N * C * V * L + N * V * W * L + N * C * W * L),
    )

    outt = pl.pallas_call(
        _nconv_dyn_kernel,
        out_shape=jax.ShapeDtypeStruct((N, L, C, W), out_dtype),
        grid_spec=pltpu.PrefetchScalarGridSpec(
            num_scalar_prefetch=0,
            grid=grid,
            in_specs=[
                pl.BlockSpec((pl.Squeezed(), tl, C, V),
                             lambda n, lt: (n, lt, 0, 0)),
                pl.BlockSpec((pl.Squeezed(), tl, V, W),
                             lambda n, lt: (n, lt, 0, 0)),
            ],
            out_specs=pl.BlockSpec((pl.Squeezed(), tl, C, W),
                                   lambda n, lt: (n, lt, 0, 0)),
        ),
        compiler_params=pltpu.CompilerParams(
            dimension_semantics=("parallel", "parallel"),
            vmem_limit_bytes=32 * 1024 * 1024,
        ),
        cost_estimate=cost,
    )(xt, at)

    # (N, L, C, W) -> (N, C, W, L); the result is materialized contiguously,
    # matching torch's .contiguous().
    return jnp.transpose(outt, (0, 2, 3, 1))


if __name__ == "__main__":
    key = jax.random.PRNGKey(0)
    kx, ka = jax.random.split(key)

    # Small shapes consistent with einsum 'ncvl,nvwl->ncwl'
    N, C, V, W, L = 2, 4, 16, 16, 8
    x = jax.random.normal(kx, (N, C, V, L), dtype=jnp.float32)
    A = jax.random.normal(ka, (N, V, W, L), dtype=jnp.float32)

    out = nconv_gcnm_dynamic(x, A)
    out = jax.block_until_ready(out)

    # Reference check (pure JAX einsum, matches torch.einsum semantics)
    ref = jnp.einsum("ncvl,nvwl->ncwl", x, A)
    assert out.shape == (N, C, W, L)
    assert jnp.allclose(out, ref, atol=1e-4, rtol=1e-4), "mismatch vs reference"

    print("KERNEL_OK")
</pallas_src>

<mosaic_0001>
module attributes {stable_mosaic.version = 11 : i64} {
  func.func @_nconv_dyn_kernel(%arg0: i32, %arg1: i32, %arg2: memref<1x8x4x16xf32, #tpu.memory_space<vmem>>, %arg3: memref<1x8x16x16xf32, #tpu.memory_space<vmem>>, %arg4: memref<1x8x4x16xf32, #tpu.memory_space<vmem>>) attributes {dimension_semantics = [#tpu.dimension_semantics<parallel>, #tpu.dimension_semantics<parallel>], iteration_bounds = array<i64: 2, 1>, scalar_prefetch = 0 : i64, scratch_operands = 0 : i64, tpu.core_type = #tpu.core_type<tc>, window_params = [{transform_indices = @transform_0, window_bounds = array<i64: 1, 8, 4, 16>}, {transform_indices = @transform_1, window_bounds = array<i64: 1, 8, 16, 16>}, {transform_indices = @transform_2, window_bounds = array<i64: 1, 8, 4, 16>}]} {
    %c0 = arith.constant 0 : index
    %c0_0 = arith.constant 0 : index
    %c0_1 = arith.constant 0 : index
    %c0_2 = arith.constant 0 : index
    %0 = vector.load %arg2[%c0, %c0_0, %c0_1, %c0_2] : memref<1x8x4x16xf32, #tpu.memory_space<vmem>>, vector<1x8x4x16xf32>
    %1 = vector.shape_cast %0 : vector<1x8x4x16xf32> to vector<8x4x16xf32>
    %c0_3 = arith.constant 0 : index
    %c0_4 = arith.constant 0 : index
    %c0_5 = arith.constant 0 : index
    %c0_6 = arith.constant 0 : index
    %2 = vector.load %arg3[%c0_3, %c0_4, %c0_5, %c0_6] : memref<1x8x16x16xf32, #tpu.memory_space<vmem>>, vector<1x8x16x16xf32>
    %3 = vector.shape_cast %2 : vector<1x8x16x16xf32> to vector<8x16x16xf32>
    "tpu.trace_start"() <{level = 10 : i32, message = "lcv,lvw->lcw"}> : () -> ()
    %cst = arith.constant dense<0.000000e+00> : vector<8x4x16xf32>
    %4 = tpu.matmul %1, %3, %cst {dimension_numbers = #tpu.dot_dimension_numbers<[2], [1], [1], [2], [0, 0, 0, 1, 1, 2], [0], [0]>} : vector<8x4x16xf32>, vector<8x16x16xf32>, vector<8x4x16xf32> -> vector<8x4x16xf32>
    "tpu.trace_stop"() : () -> ()
    %c0_7 = arith.constant 0 : index
    %c0_8 = arith.constant 0 : index
    %c0_9 = arith.constant 0 : index
    %c0_10 = arith.constant 0 : index
    %5 = vector.load %arg4[%c0_7, %c0_8, %c0_9, %c0_10] : memref<1x8x4x16xf32, #tpu.memory_space<vmem>>, vector<1x8x4x16xf32>
    %6 = vector.shape_cast %5 : vector<1x8x4x16xf32> to vector<8x4x16xf32>
    %7 = vector.shape_cast %4 : vector<8x4x16xf32> to vector<1x8x4x16xf32>
    tpu.vector_store %arg4[%c0_7, %c0_8, %c0_9, %c0_10], %7 {strides = array<i32>} : memref<1x8x4x16xf32, #tpu.memory_space<vmem>>, vector<1x8x4x16xf32>,
    return
  }
  func.func @transform_0(%arg0: i32, %arg1: i32) -> (i32, i32, i32, i32) {
    %c0_i32 = arith.constant 0 : i32
    %c0_i32_0 = arith.constant 0 : i32
    %c0_i32_1 = arith.constant 0 : i32
    return %arg0, %arg1, %c0_i32, %c0_i32_0 : i32, i32, i32, i32
  }
  func.func @transform_1(%arg0: i32, %arg1: i32) -> (i32, i32, i32, i32) {
    %c0_i32 = arith.constant 0 : i32
    %c0_i32_0 = arith.constant 0 : i32
    %c0_i32_1 = arith.constant 0 : i32
    return %arg0, %arg1, %c0_i32, %c0_i32_0 : i32, i32, i32, i32
  }
  func.func @transform_2(%arg0: i32, %arg1: i32) -> (i32, i32, i32, i32) {
    %c0_i32 = arith.constant 0 : i32
    %c0_i32_0 = arith.constant 0 : i32
    %c0_i32_1 = arith.constant 0 : i32
    return %arg0, %arg1, %c0_i32, %c0_i32_0 : i32, i32, i32, i32
  }
}

</mosaic_0001>

<bundles_post_ra>
// kernel: tpu_custom_call.1
= control target key start
LH: loop header
LB: loop body
LE: loop exit
PB: predicated region body
PF: predicated region fallthrough
CT: control target
= control target key end

     0   :  { %s1048_s0 = inlined_call_operand.hbm [shape: f32[2,8,4,16], index: 0, kind: input, shape index: {}]   ;;  %s1049_s1 = inlined_call_operand.hbm [shape: f32[2,8,16,16], index: 1, kind: input, shape index: {}]   ;;  %s1050_s2 = inlined_call_operand.hbm [shape: f32[2,8,4,16], index: 2, kind: output, shape index: {}]  }
   0x1   :  { %1051 = sst [smem:[#allocation11_spill]] %s1048_s0 }
   0x2   :  { %7 = vsyncpa [#allocation3], 0 }
   0x3   :  { %9 = vsyncpa [#allocation3 + $0x1], 0 }
   0x4   :  { %10 = vsyncpa [#allocation6], 0 }
   0x5   :  { %12 = vsyncpa [#allocation6 + $0x1], 0 }
   0x6   :  { %13 = vsyncpa [#allocation4], 0 }
   0x7   :  { %15 = vsyncpa [#allocation4 + $0x1], 0  ;;  %s853_s9 = smov 0   ;;  %s855_s10 = smov 0  }
   0x8   :  { %s857_s11 = smov 0   ;;  %s859_s12 = smov 0  }
   0x9   :  { %s861_s13 = smov 0   ;;  %s863_s14 = smov 0  }
   0xa LB: > { %s581_s15 = sadd.s32 4294967295, %s830_s14   ;;  %s582_s16 = sadd.s32 4294967294, %s830_s14   ;;  %s830_s14 = sphi %s863_s14, %s21_s14   ;;  %s826_s13 = sphi %s861_s13, %s1062_s13   ;;  %s822_s12 = sphi %s859_s12, %s1061_s12   ;;  %s818_s11 = sphi %s857_s11, %s1060_s11   ;;  %s814_s10 = sphi %s855_s10, %s1059_s10   ;;  %s810_s9 = sphi %s853_s9, %s1058_s9  }
   0xb   : > { %s33_s17 = sadd.s32 1, %s826_s13  ;;  %s42_s18 = sadd.s32 1, %s818_s11 }
   0xc   : > { %p35_p0 = scmp.ge.s32.totalorder %s33_s17, 2  ;;  %p49_p1 = scmp.ne.s32.totalorder %s818_s11, %s814_s10 }
   0xd   : > { %p50_p2 = scmp.eq.s32.totalorder %s830_s14, 0  ;;  %p55_p3 = scmp.ne.s32.totalorder %s814_s10, %s810_s9 }
   0xe   : > { %s1064_s17 = smov (%p35_p0, %s33_s17), 0  ;;  %p56_p5 = scmp.eq.s32.totalorder %s581_s15, 0 }
   0xf   : > { %p894_p4 = por %p50_p2, %p49_p1  ;;  %s37_s20 = ssub.s32 %s826_s13, %s1064_s17 }
  0x10   : > { %p109_p6 = scmp.eq.s32.totalorder %s581_s15, 1  ;;  %p40_p7 = scmp.eq.s32.totalorder %s37_s20, 0 }
  0x11   : > { %p900_p8 = por %p56_p5, %p55_p3  ;;  %p115_p10 = scmp.eq.s32.totalorder %s582_s16, 1 }
  0x12   : > { %p904_p9 = por %p109_p6, %p49_p1  ;;  %p584_p12 = scmp.ge.s32.totalorder %s830_s14, 2 }
  0x13   : > { %s909_s23 = scalar_select %p40_p7, %s818_s11, %s42_s18  }
  0x14   : > { %p911_p11 = por %p115_p10, %p55_p3  ;;  %p628_p13 = scmp.lt.s32.totalorder %s830_s14, 2 }
  0x15   : > { %s918_s25 = sand.u32 1, %s818_s11   ;;  %s608_s27 = sshll.u32 %s826_s13, 5 }
  0x16   : > { %s585_s26 = sshll.u32 %s918_s25, 5  ;;  %s1056_s0 = sld [smem:[#allocation11_spill]] }
  0x17   : > { %s139_s3 = scalar_lea.vmem [#allocation2], %s585_s26  ;;  %p927_p0 = pnand %p628_p13, %p894_p4 }
  0x18   : > { %s149_s4 = sshll.u32 %s139_s3, 4  ;;  %p591_p1 = scmp.ge.s32.totalorder %s830_s14, 1  ;;  %s150_s4 = int_to_ptr.vmem [resolvable:$true] %s149_s4 }
  0x19   : > { %s136_s7 = scalar_lea.sflag [#allocation3], %s918_s25  ;;  %s832_s8 = smov 64  }
  0x1a   : > { %s833_s15 = smov 4   ;;  %p182_p2 = scmp.lt.s32.totalorder %s830_s14, 3 }
  0x1b   : > { %s588_s16 = sshll.u32 %s918_s25, 7  ;;  %s609_s18 = sshll.u32 %s826_s13, 7 }
  0x1c   : > { %s146_s30 = scalar_lea.hbm %s1056_s0, %s608_s27  ;;  %p183_p3 = pnand %p591_p1, %p182_p2 }
  0x1d   : > { %s147_s5 = sshll.u32 %s146_s30, 4  ;;  %s171_s19 = scalar_lea.hbm %s1049_s1, %s609_s18  ;;  %s148_s5 = int_to_ptr.hbm [resolvable:$true] %s147_s5 }
  0x1e   : > { %620 = dma.hbm_to_vmem [thread:$0]  (!%p927_p0), %s148_s5, 512, %s150_s4, %s136_s7, %s832_s8, %s832_s8, %s833_s15  }
  0x1f   : > { %s163_s27 = scalar_lea.vmem [#allocation5], %s588_s16  ;;  %s172_s29 = sshll.u32 %s171_s19, 4  ;;  %s173_s29 = int_to_ptr.hbm [resolvable:$true] %s172_s29 }
  0x20   : > { %s174_s28 = sshll.u32 %s163_s27, 4  ;;  %s160_s30 = scalar_lea.sflag [#allocation6], %s918_s25  ;;  %s175_s28 = int_to_ptr.vmem [resolvable:$true] %s174_s28 }
  0x21   : > { %s834_s3 = smov 128   ;;  %s835_s0 = smov 8  }
  0x22   : > { %623 = dma.hbm_to_vmem [thread:$0]  (!%p927_p0), %s173_s29, 2048, %s175_s28, %s160_s30, %s834_s3, %s834_s3, %s835_s0  }
  0x23   : > { %186 = sbr.rel (%p183_p3) target bundleno = 194 (0xc2), region = 28  ;;  %s945_s4 = sand.u32 (!%p183_p3), 1, %s814_s10  }
  0x24   : > { %s592_s5 = sshll.u32 (!%p183_p3), %s945_s4, 5  ;;  %s189_s7 = scalar_lea.sflag (!%p183_p3), [#allocation3], %s945_s4 }
  0x25   : > { %s951_s8 = scalar_lea.vmem (!%p183_p3), [#allocation2], %s592_s5 }
  0x28   : > { %797 = dma.done.wait (%p900_p8), %s189_s7, 512  }
  0x29   : > { %799 = vsyncadd (%p900_p8), %s189_s7, 4294966784  ;;  %s593_s0 = sshll.u32 %s945_s4, 7  ;;  %s199_s25 = scalar_lea.sflag [#allocation6], %s945_s4 }
  0x2a   : > { %s959_s6 = scalar_lea.vmem [#allocation5], %s593_s0 }
  0x2b   : > { %801 = dma.done.wait (%p900_p8), %s199_s25, 2048  }
  0x2c   : > { %803 = vsyncadd (%p900_p8), %s199_s25, 4294965248  ;;  %v245_v0 = vld [vmem:[%s959_s6 + $0x28] sm:$0xff]  ;;  %v247_v1 = vld [vmem:[%s959_s6 + $0x38] sm:$0xff]  ;;  %vm256_vm0 = vcmask 130048   ;;  %vm441_vm1 = vcmask 125952   ;;  %s610_s21 = sshll.u32 %s822_s12, 5 }
  0x2d   : > { %v244_v2 = vld [vmem:[%s959_s6 + $0x20] sm:$0xff]  ;;  %320 = vmatpush.msra.mxu2 %v245_v0  ;;  %343 = vmatpush.msra.mxu3 %v247_v1  ;;  %v246_v3 = vld [vmem:[%s959_s6 + $0x30] sm:$0xff]  ;;  %v234_v4 = vld [vmem:[%s951_s8 + $0x8] sm:$0xf]  ;;  %s228_s15 = scalar_lea.vmem [#allocation7], %s592_s5  ;;  %s464_s20 = scalar_lea.hbm %s1050_s2, %s610_s21 }
  0x2e   : > { %v235_v5 = vld [vmem:[%s951_s8 + $0xc] sm:$0xf]  ;;  %v255_v7 = vld [vmem:[%s959_s6 + $0x78] sm:$0xff]  ;;  %v252_v10 = vld [vmem:[%s959_s6 + $0x60] sm:$0xff]  ;;  %s465_s26 = sshll.u32 %s228_s15, 4  ;;  %s467_s19 = sshll.u32 %s464_s20, 4  ;;  %s1007_s26 = int_to_ptr.vmem [resolvable:$true] %s465_s26  ;;  %s468_s19 = int_to_ptr.hbm [resolvable:$true] %s467_s19 }
  0x2f   : > { %v253_v6 = vld [vmem:[%s959_s6 + $0x68] sm:$0xff]  ;;  %321 = vmatpush.msra.mxu2 %v244_v2  ;;  %344 = vmatpush.msra.mxu3 %v246_v3  ;;  %v243_v9 = vld [vmem:[%s959_s6 + $0x18] sm:$0xff]  ;;  %v254_v11 = vld [vmem:[%s959_s6 + $0x70] sm:$0xff]  ;;  %s451_s12 = scalar_lea.sflag [#allocation4], %s945_s4  ;;  %s758_s27 = sshra.s32 %s468_s19, 4  ;;  %s759_s27 = int_to_ptr.hbm [resolvable:$true] %s758_s27 }
  0x30   : > { %v241_v8 = vld [vmem:[%s959_s6 + $0x8] sm:$0xff]  ;;  %597 = vmatmul.msk.f32.vlgmr.msra.gmra.mxu2 %vm256_vm0, %v234_v4  ;;  %598 = vmatmul.msk.f32.vlgmr.msra.gmra.mxu3 %vm256_vm0, %v235_v5  ;;  %v240_v12 = vld [vmem:[%s959_s6] sm:$0xff]  ;;  %v242_v13 = vld [vmem:[%s959_s6 + $0x10] sm:$0xff]  ;;  %s760_s28 = scalar_lea.hbm %s759_s27, 32  ;;  %s764_s3 = scalar_lea.hbm %s1050_s2, 64 }
  0x31   : > { %412 = vmatpush.msrb.mxu2 %v253_v6  ;;  %435 = vmatpush.msrb.mxu3 %v255_v7  ;;  %v232_v14 = vld [vmem:[%s951_s8] sm:$0xf]  ;;  %v233_v15 = vld [vmem:[%s951_s8 + $0x4] sm:$0xf]  ;;  %v249_v16 = vld [vmem:[%s959_s6 + $0x48] sm:$0xff]  ;;  %p761_p4 = scmp.ne.s32.totalorder %s759_s27, %s760_s28  ;;  %p765_p7 = scmp.lt.s32.totalorder %s759_s27, %s1050_s2 }
  0x32   : > { %274 = vmatpush.msra.mxu0 %v241_v8  ;;  %297 = vmatpush.msra.mxu1 %v243_v9  ;;  %v251_v17 = vld [vmem:[%s959_s6 + $0x58] sm:$0xff]  ;;  %v248_v20 = vld [vmem:[%s959_s6 + $0x40] sm:$0xff]  ;;  %v250_v21 = vld [vmem:[%s959_s6 + $0x50] sm:$0xff]  ;;  %p766_p8 = scmp.lt.s32.totalorder %s764_s3, %s760_s28 }
  0x33   : > { %413 = vmatpush.msrb.mxu2 %v252_v10  ;;  %436 = vmatpush.msrb.mxu3 %v254_v11  ;;  %v238_v18 = vld [vmem:[%s951_s8 + $0x18] sm:$0xf]  ;;  %v239_v19 = vld [vmem:[%s951_s8 + $0x1c] sm:$0xf]  ;;  %v236_v22 = vld [vmem:[%s951_s8 + $0x10] sm:$0xf]  ;;  %p762_p5 = pnand %p761_p4, %p904_p9 }
  0x34   : > { %275 = vmatpush.msra.mxu0 %v240_v12  ;;  %298 = vmatpush.msra.mxu1 %v242_v13  ;;  %v237_v23 = vld [vmem:[%s951_s8 + $0x14] sm:$0xf]  ;;  %p767_p10 = por %p766_p8, %p765_p7 }
  0x35   : > { %595 = vmatmul.msk.f32.vlgmr.msra.gmra.mxu0 %vm256_vm0, %v232_v14  ;;  %596 = vmatmul.msk.f32.vlgmr.msra.gmra.mxu1 %vm256_vm0, %v233_v15  ;;  %p763_p6 = pneg %p762_p5 }
  0x36   : > { %366 = vmatpush.msrb.mxu0 %v249_v16  ;;  %389 = vmatpush.msrb.mxu1 %v251_v17 }
  0x37   : > { %p768_p13 = pnand %p767_p10, %p763_p6 }
  0x38   : > { %601 = vmatmul.msk.f32.vlgmr.msrb.gmra.mxu2 %vm256_vm0, %v238_v18  ;;  %602 = vmatmul.msk.f32.vlgmr.msrb.gmra.mxu3 %vm256_vm0, %v239_v19 }
  0x39   : > { %367 = vmatpush.msrb.mxu0 %v248_v20  ;;  %390 = vmatpush.msrb.mxu1 %v250_v21 }
  0x3d   : > { %599 = vmatmul.msk.f32.vlgmr.msrb.gmra.mxu0 %vm256_vm0, %v236_v22  ;;  %600 = vmatmul.msk.f32.vlgmr.msrb.gmra.mxu1 %vm256_vm0, %v237_v23 }
  0xb2   : > { %v277_v24 = vpop.f32.mrf.mxu0  ;;  %v300_v25 = vpop.f32.mrf.mxu1 }
  0xb3   : > { %442 = vst.msk [vmem:[%s228_s15] sm:$0xf] %vm441_vm1, %v277_v24  ;;  %v323_v26 = vpop.f32.mrf.mxu2  ;;  %v346_v27 = vpop.f32.mrf.mxu3 }
  0xb4   : > { %443 = vst.msk [vmem:[%s228_s15 + $0x4] sm:$0xf] %vm441_vm1, %v300_v25 }
  0xb5   : > { %444 = vst.msk [vmem:[%s228_s15 + $0x8] sm:$0xf] %vm441_vm1, %v323_v26 }
  0xb6   : > { %445 = vst.msk [vmem:[%s228_s15 + $0xc] sm:$0xf] %vm441_vm1, %v346_v27 }
  0xba   : > { %v369_v28 = vpop.f32.mrf.mxu0  ;;  %v392_v29 = vpop.f32.mrf.mxu1 }
  0xbb   : > { %446 = vst.msk [vmem:[%s228_s15 + $0x10] sm:$0xf] %vm441_vm1, %v369_v28  ;;  %v415_v30 = vpop.f32.mrf.mxu2  ;;  %v438_v31 = vpop.f32.mrf.mxu3 }
  0xbc   : > { %447 = vst.msk [vmem:[%s228_s15 + $0x14] sm:$0xf] %vm441_vm1, %v392_v29 }
  0xbd   : > { %448 = vst.msk [vmem:[%s228_s15 + $0x18] sm:$0xf] %vm441_vm1, %v415_v30 }
  0xbe   : > { %449 = vst.msk [vmem:[%s228_s15 + $0x1c] sm:$0xf] %vm441_vm1, %v438_v31 }
  0xbf   : > { %771 = shalt.err (!%p768_p13)
}
  0xc0   : > { %s836_s4 = smov 64   ;;  %s837_s8 = smov 4  }
  0xc1   : > { %615 = dma.vmem_to_hbm [thread:$0]  (%p904_p9), %s1007_s26, 512, %s468_s19, %s451_s12, %s836_s4, %s836_s4, %s837_s8  }
  0xc2 PF: > { %s482_s0 = sand.u32 1, %s810_s9   ;;  %p625_p0 = pnand %p584_p12, %p911_p11 }
  0xc3   : > { %s483_s25 = scalar_lea.sflag [#allocation4], %s482_s0 }
  0xc4   : > { %p626_p1 = pneg %p625_p0 }
  0xc6   : > { %805 = dma.done.wait (%p626_p1), %s483_s25, 512  }
  0xc7   : > { %807 = vsyncadd (%p626_p1), %s483_s25, 4294966784  ;;  %s21_s14 = sadd.s32 1, %s830_s14   ;;  %s1058_s9 = smov %s814_s10 }
  0xc8   : > { %p18_p2 = scmp.ge.s32.totalorder %s21_s14, 4   ;;  %s1059_s10 = smov %s818_s11 }
  0xc9   : > { %s1060_s11 = smov %s909_s23  ;;  %s1061_s12 = smov %s826_s13 }
  0xca   : > { %s1062_s13 = smov %s1064_s17  ;;  %20 = sbr.rel (!%p18_p2) target bundleno = 10 (0xa), region = 86 }
  0xcf   :  { %489 = vsyncpa [#allocation3], 1 }
  0xd0   :  { %491 = vsyncpa [#allocation3 + $0x1], 1 }
  0xd1   :  { %492 = vsyncpa [#allocation6], 1 }
  0xd2   :  { %494 = vsyncpa [#allocation6 + $0x1], 1 }
  0xd3   :  { %495 = vsyncpa [#allocation4], 1 }
  0xd4   :  { %497 = vsyncpa [#allocation4 + $0x1], 1 }

</bundles_post_ra>
